<compile_context>
chip_gen: v6e
topology: v6e:2x2x1
jax: 0.10.0
libtpu: 0.0.40
codegen_flags: <defaults>
</compile_context>

<pallas_src>
import jax
import jax.numpy as jnp
from jax import lax
from jax.experimental import pallas as pl
from jax.experimental.pallas import tpu as pltpu

EPS = 1e-5
LANES = 128
SUBLANES = 8
NEG = -3.0e38  # large negative for additive max-pool masks (f32-safe)


def _round_up(x, m):
    return (x + m - 1) // m * m


# ----------------------------- Pallas kernel -----------------------------------------------
def _make_kernel(TB, Lp, NFb):
    def kernel(xc_ref, w1_ref, b1_ref, w2_ref, b2_ref, mask_ref, out_ref):
        xc = xc_ref[...]                                                # (TB*Lp, Kmax*C) bf16

        # conv1 for ALL branches (K taps folded by im2col) + residual 1x1, all in ONE MXU pass.
        # Output lanes [0, NFb) = branch conv1 (+ folded BN1 bias), [NFb, 2*NFb) = residual.
        h = jnp.dot(xc, w1_ref[...], preferred_element_type=jnp.float32) + b1_ref[...]

        hb = jnp.maximum(h[:, :NFb], 0.0)                               # conv1 + BN1 + ReLU

        # 1x1 conv2 for ALL branches (block-diagonal) + folded BN2 + ReLU -> one MXU push
        h2 = jnp.dot(hb.astype(jnp.bfloat16), w2_ref[...],
                     preferred_element_type=jnp.float32) + b2_ref[...]
        h2 = jnp.maximum(h2, 0.0)

        # per-batch global max-pool with precomputed additive 0/NEG row masks
        # (invalid conv positions / padded rows excluded from the max).
        m = mask_ref[...]                                               # (Lp, 2*NFb) f32
        feat = jnp.max(h2.reshape(TB, Lp, NFb) + m[:, :NFb], axis=1)    # (TB, NFb)
        res = jnp.max(h[:, NFb:].reshape(TB, Lp, NFb) + m[:, NFb:], axis=1)

        out_ref[0] = feat + res                                         # dense 128-lane store

    return kernel


# ----------------------------- plain-JAX glue -----------------------------------------------
def _fold_bn(w, b, gamma, beta, mean, var, eps=EPS):
    """Fold eval-mode BatchNorm1d into the preceding Conv1d. w: (F, Cin, K), b: (F,)."""
    scale = gamma / jnp.sqrt(var + eps)
    w_eff = w * scale[:, None, None]
    b_eff = scale * (b - mean) + beta
    return w_eff, b_eff


def cnn_extractor_pallas(x, params, feature_kernel, *, batch_tile=None):
    """x: (B, L, C) float32 (original PyTorch layout before its internal permute).
    Returns (B, sum_feat) float32."""
    B, L, C = x.shape
    feats = list(feature_kernel.items())
    sum_feat = sum(feature_kernel.values())
    Kmax = max(feature_kernel.keys())
    assert L >= Kmax, "sequence length must be >= the largest conv kernel size"

    NFb = _round_up(sum_feat, LANES)         # lane-padded branch-output width
    NFt = 2 * NFb                            # branch half + residual half
    Lp = _round_up(L, SUBLANES)              # sublane-padded sequence length
    KC = Kmax * C

    if batch_tile is None:
        # ~256 LHS rows per MXU push (v6e/v7x 2x256 MXU), but keep >= 2 grid steps so both
        # v7x TensorCores get work for small batch and tiny batches aren't padded up.
        batch_tile = max(1, min(max(1, 256 // Lp), -(-B // 2)))
    TB = batch_tile
    Bp = _round_up(max(B, TB), TB)
    steps = Bp // TB

    # ---- fold BN, build fused / lane-padded weights + additive masks --------------------
    w1_all = jnp.zeros((KC, NFt), jnp.float32)       # [branch conv1 taps | residual 1x1]
    b1_all = jnp.zeros((1, NFt), jnp.float32)
    w2_all = jnp.zeros((NFb, NFb), jnp.float32)      # block-diagonal 1x1 conv2
    b2_all = jnp.zeros((1, NFb), jnp.float32)
    mask = jnp.zeros((Lp, NFt), jnp.float32)         # additive 0 / NEG
    t_idx = jnp.arange(Lp)[:, None]

    off = 0
    for i, (K, F) in enumerate(feats):
        p = params["branches"][i]
        w1_eff, b1_eff = _fold_bn(p["w1"], p["b1"], p["g1"], p["be1"], p["m1"], p["v1"])
        w2_eff, b2_eff = _fold_bn(p["w2"], p["b2"], p["g2"], p["be2"], p["m2"], p["v2"])
        w1_t = jnp.transpose(w1_eff, (2, 1, 0)).reshape(K * C, F)   # (K*C, F), tap-major
        w1_all = w1_all.at[:K * C, off:off + F].set(w1_t)           # taps >= K stay zero
        b1_all = b1_all.at[0, off:off + F].set(b1_eff)
        w2_all = w2_all.at[off:off + F, off:off + F].set(w2_eff[:, :, 0].T)
        b2_all = b2_all.at[0, off:off + F].set(b2_eff)
        mask = mask.at[:, off:off + F].set(jnp.where(t_idx < (L - K + 1), 0.0, NEG))
        off += F

    # residual 1x1 conv as extra output lanes [NFb, NFb+sum_feat) of the conv1 matmul
    # (its inputs are the tap-0 columns of the im2col slab; taps >= 1 stay zero).
    w1_all = w1_all.at[:C, NFb:NFb + sum_feat].set(params["residual"]["w"][:, :, 0].T)
    b1_all = b1_all.at[0, NFb:NFb + sum_feat].set(params["residual"]["b"])
    mask = mask.at[:, NFb:].set(jnp.where(t_idx < L, 0.0, NEG))     # residual row mask

    # ---- im2col in plain JAX: (B_pad*Lp, Kmax*C), bf16 ----------------------------------
    xp = jnp.zeros((Bp, Lp + Kmax - 1, C), x.dtype).at[:B, :L, :].set(x)
    x_col = jnp.concatenate([xp[:, k:k + Lp, :] for k in range(Kmax)], axis=-1)
    x_col = x_col.reshape(Bp * Lp, KC).astype(jnp.bfloat16)

    w1_all = w1_all.astype(jnp.bfloat16)
    w2_all = w2_all.astype(jnp.bfloat16)

    kernel = _make_kernel(TB, Lp, NFb)

    def const_spec(a):
        # constant index map -> single-buffer (no point double-buffering weights/masks)
        return pl.BlockSpec(a.shape, lambda b: (0, 0), pipeline_mode=pl.Buffered(1))

    out = pl.pallas_call(
        kernel,
        out_shape=jax.ShapeDtypeStruct((steps, TB, NFb), jnp.float32),
        grid_spec=pltpu.PrefetchScalarGridSpec(
            num_scalar_prefetch=0,
            grid=(steps,),
            in_specs=[pl.BlockSpec((TB * Lp, KC), lambda b: (b, 0)),
                      const_spec(w1_all), const_spec(b1_all),
                      const_spec(w2_all), const_spec(b2_all),
                      const_spec(mask)],
            out_specs=pl.BlockSpec((1, TB, NFb), lambda b: (b, 0, 0)),
        ),
        compiler_params=pltpu.CompilerParams(
            dimension_semantics=("parallel",),
            vmem_limit_bytes=32 * 1024 * 1024),
    )(x_col, w1_all, b1_all, w2_all, b2_all, mask)

    return out.reshape(Bp, NFb)[:B, :sum_feat]


# ----------------------------- reference & params --------------------------------------------
def _bn_eval(y, g, be, m, v, eps=EPS):
    return (y - m[None, :, None]) / jnp.sqrt(v[None, :, None] + eps) * g[None, :, None] + be[None, :, None]


def reference_forward(x, params, feature_kernel):
    dn = ("NCH", "OIH", "NCH")
    xt = jnp.transpose(x, (0, 2, 1))                              # (B, C, L)
    wr, br = params["residual"]["w"], params["residual"]["b"]
    residual = lax.conv_general_dilated(xt, wr, (1,), "VALID", dimension_numbers=dn)
    residual = residual + br[None, :, None]
    feats = []
    for i, (K, F) in enumerate(feature_kernel.items()):
        p = params["branches"][i]
        y = lax.conv_general_dilated(xt, p["w1"], (1,), "VALID", dimension_numbers=dn) + p["b1"][None, :, None]
        y = jnp.maximum(_bn_eval(y, p["g1"], p["be1"], p["m1"], p["v1"]), 0.0)
        y = lax.conv_general_dilated(y, p["w2"], (1,), "VALID", dimension_numbers=dn) + p["b2"][None, :, None]
        y = jnp.maximum(_bn_eval(y, p["g2"], p["be2"], p["m2"], p["v2"]), 0.0)
        feats.append(jnp.max(y, axis=-1))                         # (B, F) global max pool
    feat = jnp.concatenate(feats, axis=1)
    return feat + jnp.max(residual, axis=-1)


def init_params(key, input_size, feature_kernel):
    n_branch = len(feature_kernel)
    keys = jax.random.split(key, 2 + 12 * n_branch)
    sum_feat = sum(feature_kernel.values())
    params = {
        "residual": {
            "w": 0.1 * jax.random.normal(keys[0], (sum_feat, input_size, 1), jnp.float32),
            "b": 0.1 * jax.random.normal(keys[1], (sum_feat,), jnp.float32),
        },
        "branches": [],
    }
    idx = 2
    for K, F in feature_kernel.items():
        k = keys[idx:idx + 12]
        idx += 12
        params["branches"].append({
            "w1": 0.1 * jax.random.normal(k[0], (F, input_size, K), jnp.float32),
            "b1": 0.1 * jax.random.normal(k[1], (F,), jnp.float32),
            "g1": 0.5 + jax.random.uniform(k[2], (F,), jnp.float32),
            "be1": 0.1 * jax.random.normal(k[3], (F,), jnp.float32),
            "m1": 0.1 * jax.random.normal(k[4], (F,), jnp.float32),
            "v1": 0.5 + jax.random.uniform(k[5], (F,), jnp.float32),
            "w2": 0.1 * jax.random.normal(k[6], (F, F, 1), jnp.float32),
            "b2": 0.1 * jax.random.normal(k[7], (F,), jnp.float32),
            "g2": 0.5 + jax.random.uniform(k[8], (F,), jnp.float32),
            "be2": 0.1 * jax.random.normal(k[9], (F,), jnp.float32),
            "m2": 0.1 * jax.random.normal(k[10], (F,), jnp.float32),
            "v2": 0.5 + jax.random.uniform(k[11], (F,), jnp.float32),
        })
    return params


if __name__ == "__main__":
    B, L, C = 2, 16, 8                       # batch, seq_len, input_size
    feature_kernel = {3: 8, 5: 8}            # {kernel_size: feature_num}; sum_feat = 16

    key = jax.random.PRNGKey(0)
    kx, kp = jax.random.split(key)
    x = jax.random.normal(kx, (B, L, C), jnp.float32)
    params = init_params(kp, C, feature_kernel)

    out = cnn_extractor_pallas(x, params, feature_kernel)
    out = jax.block_until_ready(out)

    ref = reference_forward(x, params, feature_kernel)
    assert out.shape == (B, sum(feature_kernel.values())), out.shape
    # bf16 MXU operands with f32 accumulation -> relaxed tolerance vs. f32 reference.
    if not jnp.allclose(out, ref, rtol=5e-2, atol=5e-2):
        raise AssertionError(
            f"mismatch: max abs err = {float(jnp.max(jnp.abs(out - ref)))}")
    print("KERNEL_OK")
</pallas_src>

<mosaic_0001>
module attributes {stable_mosaic.version = 11 : i64} {
  func.func @kernel(%arg0: i32, %arg1: memref<16x40xbf16, #tpu.memory_space<vmem>>, %arg2: memref<40x256xbf16, #tpu.memory_space<vmem>>, %arg3: memref<1x256xf32, #tpu.memory_space<vmem>>, %arg4: memref<128x128xbf16, #tpu.memory_space<vmem>>, %arg5: memref<1x128xf32, #tpu.memory_space<vmem>>, %arg6: memref<16x256xf32, #tpu.memory_space<vmem>>, %arg7: memref<1x1x128xf32, #tpu.memory_space<vmem>>) attributes {dimension_semantics = [#tpu.dimension_semantics<parallel>], iteration_bounds = array<i64: 2>, scalar_prefetch = 0 : i64, scratch_operands = 0 : i64, tpu.core_type = #tpu.core_type<tc>, window_params = [{transform_indices = @transform_0, window_bounds = array<i64: 16, 40>}, {pipeline_mode = #tpu.pipeline_mode<synchronous>, transform_indices = @transform_1, window_bounds = array<i64: 40, 256>}, {pipeline_mode = #tpu.pipeline_mode<synchronous>, transform_indices = @transform_2, window_bounds = array<i64: 1, 256>}, {pipeline_mode = #tpu.pipeline_mode<synchronous>, transform_indices = @transform_3, window_bounds = array<i64: 128, 128>}, {pipeline_mode = #tpu.pipeline_mode<synchronous>, transform_indices = @transform_4, window_bounds = array<i64: 1, 128>}, {pipeline_mode = #tpu.pipeline_mode<synchronous>, transform_indices = @transform_5, window_bounds = array<i64: 16, 256>}, {transform_indices = @transform_6, window_bounds = array<i64: 1, 1, 128>}]} {
    %c0 = arith.constant 0 : index
    %c0_0 = arith.constant 0 : index
    %0 = vector.load %arg1[%c0, %c0_0] : memref<16x40xbf16, #tpu.memory_space<vmem>>, vector<16x40xbf16>
    %c0_1 = arith.constant 0 : index
    %c0_2 = arith.constant 0 : index
    %1 = vector.load %arg2[%c0_1, %c0_2] : memref<40x256xbf16, #tpu.memory_space<vmem>>, vector<40x256xbf16>
    %cst = arith.constant dense<0.000000e+00> : vector<16x256xf32>
    %2 = tpu.matmul %0, %1, %cst {dimension_numbers = #tpu.dot_dimension_numbers<[1], [0], [0], [1], [0, 0, 1, 1], [], []>} : vector<16x40xbf16>, vector<40x256xbf16>, vector<16x256xf32> -> vector<16x256xf32>
    %c0_3 = arith.constant 0 : index
    %c0_4 = arith.constant 0 : index
    %3 = vector.load %arg3[%c0_3, %c0_4] : memref<1x256xf32, #tpu.memory_space<vmem>>, vector<1x256xf32>
    %4 = vector.broadcast %3 : vector<1x256xf32> to vector<16x256xf32>
    %5 = arith.addf %2, %4 : vector<16x256xf32>
    %6 = vector.extract_strided_slice %5 {offsets = [0, 0], sizes = [16, 128], strides = [1, 1]} : vector<16x256xf32> to vector<16x128xf32>
    %cst_5 = arith.constant 0.000000e+00 : f32
    %7 = vector.broadcast %cst_5 : f32 to vector<16x128xf32>
    %8 = arith.maximumf %6, %7 : vector<16x128xf32>
    %9 = arith.truncf %8 : vector<16x128xf32> to vector<16x128xbf16>
    %c0_6 = arith.constant 0 : index
    %c0_7 = arith.constant 0 : index
    %10 = vector.load %arg4[%c0_6, %c0_7] : memref<128x128xbf16, #tpu.memory_space<vmem>>, vector<128x128xbf16>
    %cst_8 = arith.constant dense<0.000000e+00> : vector<16x128xf32>
    %11 = tpu.matmul %9, %10, %cst_8 {dimension_numbers = #tpu.dot_dimension_numbers<[1], [0], [0], [1], [0, 0, 1, 1], [], []>} : vector<16x128xbf16>, vector<128x128xbf16>, vector<16x128xf32> -> vector<16x128xf32>
    %c0_9 = arith.constant 0 : index
    %c0_10 = arith.constant 0 : index
    %12 = vector.load %arg5[%c0_9, %c0_10] : memref<1x128xf32, #tpu.memory_space<vmem>>, vector<1x128xf32>
    %13 = vector.broadcast %12 : vector<1x128xf32> to vector<16x128xf32>
    %14 = arith.addf %11, %13 : vector<16x128xf32>
    %cst_11 = arith.constant 0.000000e+00 : f32
    %15 = vector.broadcast %cst_11 : f32 to vector<16x128xf32>
    %16 = arith.maximumf %14, %15 : vector<16x128xf32>
    %c0_12 = arith.constant 0 : index
    %c0_13 = arith.constant 0 : index
    %17 = vector.load %arg6[%c0_12, %c0_13] : memref<16x256xf32, #tpu.memory_space<vmem>>, vector<16x256xf32>
    %18 = vector.shape_cast %16 : vector<16x128xf32> to vector<1x16x128xf32>
    %19 = vector.extract_strided_slice %17 {offsets = [0, 0], sizes = [16, 128], strides = [1, 1]} : vector<16x256xf32> to vector<16x128xf32>
    %20 = vector.shape_cast %19 : vector<16x128xf32> to vector<1x16x128xf32>
    %21 = arith.addf %18, %20 : vector<1x16x128xf32>
    %cst_14 = arith.constant dense<0xFF800000> : vector<1x128xf32>
    %22 = vector.multi_reduction <maximumf>, %21, %cst_14 [1] : vector<1x16x128xf32> to vector<1x128xf32>
    %23 = vector.extract_strided_slice %5 {offsets = [0, 128], sizes = [16, 128], strides = [1, 1]} : vector<16x256xf32> to vector<16x128xf32>
    %24 = vector.shape_cast %23 : vector<16x128xf32> to vector<1x16x128xf32>
    %25 = vector.extract_strided_slice %17 {offsets = [0, 128], sizes = [16, 128], strides = [1, 1]} : vector<16x256xf32> to vector<16x128xf32>
    %26 = vector.shape_cast %25 : vector<16x128xf32> to vector<1x16x128xf32>
    %27 = arith.addf %24, %26 : vector<1x16x128xf32>
    %cst_15 = arith.constant dense<0xFF800000> : vector<1x128xf32>
    %28 = vector.multi_reduction <maximumf>, %27, %cst_15 [1] : vector<1x16x128xf32> to vector<1x128xf32>
    %29 = arith.addf %22, %28 : vector<1x128xf32>
    %c0_16 = arith.constant 0 : index
    %c0_17 = arith.constant 0 : index
    %c0_18 = arith.constant 0 : index
    %30 = vector.load %arg7[%c0_16, %c0_17, %c0_18] : memref<1x1x128xf32, #tpu.memory_space<vmem>>, vector<1x1x128xf32>
    %31 = vector.shape_cast %30 : vector<1x1x128xf32> to vector<1x128xf32>
    %32 = vector.shape_cast %29 : vector<1x128xf32> to vector<1x1x128xf32>
    tpu.vector_store %arg7[%c0_16, %c0_17, %c0_18], %32 {strides = array<i32>} : memref<1x1x128xf32, #tpu.memory_space<vmem>>, vector<1x1x128xf32>,
    return
  }
  func.func @transform_0(%arg0: i32) -> (i32, i32) {
    %c0_i32 = arith.constant 0 : i32
    %c0_i32_0 = arith.constant 0 : i32
    return %arg0, %c0_i32 : i32, i32
  }
  func.func @transform_1(%arg0: i32) -> (i32, i32) {
    %c0_i32 = arith.constant 0 : i32
    %c0_i32_0 = arith.constant 0 : i32
    %c0_i32_1 = arith.constant 0 : i32
    return %c0_i32, %c0_i32_0 : i32, i32
  }
  func.func @transform_2(%arg0: i32) -> (i32, i32) {
    %c0_i32 = arith.constant 0 : i32
    %c0_i32_0 = arith.constant 0 : i32
    %c0_i32_1 = arith.constant 0 : i32
    return %c0_i32, %c0_i32_0 : i32, i32
  }
  func.func @transform_3(%arg0: i32) -> (i32, i32) {
    %c0_i32 = arith.constant 0 : i32
    %c0_i32_0 = arith.constant 0 : i32
    %c0_i32_1 = arith.constant 0 : i32
    return %c0_i32, %c0_i32_0 : i32, i32
  }
  func.func @transform_4(%arg0: i32) -> (i32, i32) {
    %c0_i32 = arith.constant 0 : i32
    %c0_i32_0 = arith.constant 0 : i32
    %c0_i32_1 = arith.constant 0 : i32
    return %c0_i32, %c0_i32_0 : i32, i32
  }
  func.func @transform_5(%arg0: i32) -> (i32, i32) {
    %c0_i32 = arith.constant 0 : i32
    %c0_i32_0 = arith.constant 0 : i32
    %c0_i32_1 = arith.constant 0 : i32
    return %c0_i32, %c0_i32_0 : i32, i32
  }
  func.func @transform_6(%arg0: i32) -> (i32, i32, i32) {
    %c0_i32 = arith.constant 0 : i32
    %c0_i32_0 = arith.constant 0 : i32
    %c0_i32_1 = arith.constant 0 : i32
    return %arg0, %c0_i32, %c0_i32_0 : i32, i32, i32
  }
}

</mosaic_0001>

<bundles_post_ra>
// kernel: tpu_custom_call.1
= control target key start
LH: loop header
LB: loop body
LE: loop exit
PB: predicated region body
PF: predicated region fallthrough
CT: control target
= control target key end

     0   :  { %11 = vsyncpa [#allocation3], 0  ;;  %s1266_s0 = inlined_call_operand.hbm [shape: bf16[32,40], index: 0, kind: input, shape index: {}]   ;;  %s1267_s1 = inlined_call_operand.hbm [shape: bf16[40,256], index: 1, kind: input, shape index: {}]   ;;  %s1268_s2 = inlined_call_operand.vmem [shape: f32[1,256], index: 2, kind: input, shape index: {}]   ;;  %s1269_s3 = inlined_call_operand.hbm [shape: bf16[128,128], index: 3, kind: input, shape index: {}]   ;;  %s1270_s4 = inlined_call_operand.vmem [shape: f32[1,128], index: 4, kind: input, shape index: {}]   ;;  %s1271_s5 = inlined_call_operand.hbm [shape: f32[16,256], index: 5, kind: input, shape index: {}]   ;;  %s1272_s6 = inlined_call_operand.hbm [shape: f32[2,1,128], index: 6, kind: output, shape index: {}]  }
   0x1   :  { %13 = vsyncpa [#allocation3 + $0x1], 0 }
   0x2   :  { %14 = vsyncpa [#allocation6], 0 }
   0x3   :  { %15 = vsyncpa [#allocation9], 0 }
   0x4   :  { %16 = vsyncpa [#allocation4], 0 }
   0x5   :  { %18 = vsyncpa [#allocation4 + $0x1], 0  ;;  %s1064_s21 = smov 0   ;;  %s1066_s22 = smov 0  }
   0x6   :  { %s1068_s23 = smov 0   ;;  %s1070_s24 = smov 0  }
   0x7 LB: > { %s1085_s25 = sadd.s32 4294967295, %s1013_s24   ;;  %s667_s26 = sadd.s32 4294967294, %s1013_s24   ;;  %s1013_s24 = sphi %s1070_s24, %s1300_s24   ;;  %s1009_s23 = sphi %s1068_s23, %s1299_s23   ;;  %s1005_s22 = sphi %s1066_s22, %s1298_s22   ;;  %s1001_s21 = sphi %s1064_s21, %s1297_s21  }
   0x8   : > { %p44_p0 = scmp.ne.s32.totalorder %s1005_s22, %s1001_s21  ;;  %p1273_p1 = scmp.eq.s32.totalorder %s1085_s25, 0 }
   0x9   : > { %p179_p3 = scmp.eq.s32.totalorder %s667_s26, 1  ;;  %p668_p5 = scmp.ge.s32.totalorder %s1013_s24, 1 }
   0xa   : > { %p1094_p4 = por %p1273_p1, %p44_p0  ;;  %p186_p7 = scmp.lt.s32.totalorder %s1013_s24, 3 }
   0xb   : > { %p1099_p6 = por %p179_p3, %p44_p0  ;;  %s1015_s30 = smov [#allocation5]  }
   0xc   : > { %s1279_s27 = scalar_select %p1094_p4, 1, 0 }
   0xd   : > { %s1280_s28 = scalar_select %p1099_p6, 1, 0 }
   0xe   : > { %p1104_p8 = pnand %p668_p5, %p186_p7  ;;  %s198_s7 = sshll.u32 %s1015_s30, 4  ;;  %s199_s7 = int_to_ptr.vmem [resolvable:$true] %s198_s7 }
   0xf   : > { %s1016_s9 = smov [#allocation7]   ;;  %s846_s11 = scalar_lea.vmem %s199_s7, 640 }
  0x10   : > { %s1281_s29 = scalar_select %p1104_p8, 1, 0 }
  0x11   : > { %p748_p9 = pneg %p1104_p8  ;;  %s214_s10 = sshll.u32 %s1016_s9, 4  ;;  %s215_s10 = int_to_ptr.vmem [resolvable:$true] %s214_s10 }
  0x12   : > { %p847_p13 = scmp.ne.s32.totalorder %s199_s7, %s846_s11  ;;  %p854_p5 = scmp.lt.s32.totalorder %s199_s7, %s199_s7 }
  0x13   : > { %p1113_p11 = pnand %p748_p9, %p1273_p1  ;;  %p855_p7 = scmp.lt.s32.totalorder %s846_s11, %s846_s11 }
  0x15   : > { %p837_p12 = pneg %p1113_p11  ;;  %p856_p10 = por %p855_p7, %p854_p5 }
  0x17   : > { %p849_p0 = pnand %p847_p13, %p837_p12 }
  0x19   : > { %p850_p3 = pneg %p849_p0 }
  0x1b   : > { %p857_p9 = pnand %p856_p10, %p850_p3 }
  0x1d   : > { %860 = shalt.err (!%p857_p9)
}
  0x1e   : > { %s1017_s12 = smov 128   ;;  %s1018_s13 = smov 8  }
  0x1f   : > { %751 = dma.hbm_to_vmem [thread:$0]  (!%p1113_p11), %s1267_s1, 640, %s199_s7, [#allocation6], %s1017_s12, %s1017_s12, %s1018_s13  }
  0x20   : > { %s872_s16 = scalar_lea.vmem %s215_s10, 1024  ;;  %p880_p2 = scmp.lt.s32.totalorder %s215_s10, %s215_s10 }
  0x21   : > { %p873_p1 = scmp.ne.s32.totalorder %s215_s10, %s872_s16  ;;  %p881_p6 = scmp.lt.s32.totalorder %s872_s16, %s872_s16 }
  0x23   : > { %p875_p13 = pnand %p873_p1, %p837_p12  ;;  %p882_p5 = por %p881_p6, %p880_p2 }
  0x25   : > { %p876_p0 = pneg %p875_p13 }
  0x27   : > { %p883_p10 = pnand %p882_p5, %p876_p0 }
  0x29   : > { %886 = shalt.err (!%p883_p10)
}
  0x2a   : > { %s1274_s17 = smov 64   ;;  %s1275_s18 = smov 4  }
  0x2b   : > { %754 = dma.hbm_to_vmem [thread:$0]  (!%p1113_p11), %s1269_s3, 1024, %s215_s10, [#allocation6], %s1274_s17, %s1274_s17, %s1275_s18  }
  0x2c   : > { %s1021_s26 = smov [#allocation8]  }
  0x2d   : > { %s230_s30 = sshll.u32 %s1021_s26, 4  ;;  %s231_s30 = int_to_ptr.vmem [resolvable:$true] %s230_s30 }
  0x2e   : > { %s898_s7 = scalar_lea.vmem %s231_s30, 512  ;;  %p906_p3 = scmp.lt.s32.totalorder %s231_s30, %s231_s30 }
  0x2f   : > { %p899_p1 = scmp.ne.s32.totalorder %s231_s30, %s898_s7  ;;  %p907_p7 = scmp.lt.s32.totalorder %s898_s7, %s898_s7 }
  0x31   : > { %p901_p2 = pnand %p899_p1, %p837_p12  ;;  %p908_p9 = por %p907_p7, %p906_p3 }
  0x33   : > { %p902_p6 = pneg %p901_p2 }
  0x35   : > { %p909_p13 = pnand %p908_p9, %p902_p6 }
  0x37   : > { %912 = shalt.err (!%p909_p13)
}
  0x38   : > { %s1022_s9 = smov 256   ;;  %s1023_s10 = smov 16  }
  0x39   : > { %757 = dma.hbm_to_vmem [thread:$0]  (!%p1113_p11), %s1271_s5, 512, %s231_s30, [#allocation9], %s1022_s9, %s1022_s9, %s1023_s10  }
  0x3a   : > { %s1147_s13 = sadd.s32 1, %s1013_s24   ;;  %s31_s15 = sadd.s32 1, %s1009_s23 }
  0x3b   : > { %s28_s14 = ssub.s32 %s1013_s24, %s1147_s13  ;;  %p38_p0 = scmp.ne.s32.totalorder %s1009_s23, %s1005_s22 }
  0x3c   : > { %p29_p12 = scmp.eq.s32.totalorder %s28_s14, 0  ;;  %p39_p5 = scmp.eq.s32.totalorder %s1013_s24, 0 }
  0x3d   : > { %p769_p10 = scmp.lt.s32.totalorder %s1013_s24, 2  ;;  %p1283_p2 = scmp.eq.s32.totalorder %s1085_s25, 1 }
  0x3e   : > { %s1157_s16 = scalar_select %p29_p12, %s1009_s23, %s31_s15  }
  0x3f   : > { %p40_p1 = por %p39_p5, %p38_p0  ;;  %p1161_p6 = por %p1283_p2, %p38_p0 }
  0x40   : > { %s244_s8 = sand.u32 1, %s1009_s23   ;;  %s702_s20 = sshll.u32 %s1013_s24, 7 }
  0x41   : > { %s1284_s19 = scalar_select %p1161_p6, 1, 0 }
  0x42   : > { %s673_s26 = sshll.u32 %s244_s8, 3  ;;  %s1170_s9 = scalar_lea.hbm %s1266_s0, %s702_s20 }
  0x43   : > { %s248_s10 = scalar_lea.vmem [#allocation2], %s673_s26  ;;  %p1172_p11 = pnand %p769_p10, %p40_p1 }
  0x44   : > { %s255_s11 = sshll.u32 %s248_s10, 4  ;;  %s1178_s14 = scalar_lea.sflag [#allocation3], %s244_s8  ;;  %s1176_s11 = int_to_ptr.vmem [resolvable:$true] %s255_s11 }
  0x45   : > { %s913_s15 = scalar_lea.hbm %s1170_s9, 128  ;;  %p915_p7 = pneg %p1172_p11 }
  0x46   : > { %p914_p3 = scmp.ne.s32.totalorder %s1170_s9, %s913_s15  ;;  %s918_s26 = scalar_lea.hbm %s1266_s0, 256 }
  0x47   : > { %p919_p12 = scmp.lt.s32.totalorder %s1170_s9, %s1266_s0  ;;  %p920_p0 = scmp.lt.s32.totalorder %s918_s26, %s913_s15 }
  0x48   : > { %p916_p9 = pnand %p915_p7, %p914_p3 }
  0x49   : > { %p921_p5 = por %p920_p0, %p919_p12 }
  0x4a   : > { %p917_p13 = pneg %p916_p9 }
  0x4c   : > { %p922_p10 = pnand %p921_p5, %p917_p13 }
  0x4e   : > { %925 = shalt.err (!%p922_p10)
}
  0x4f   : > { %s926_s8 = scalar_lea.vmem %s1176_s11, 128  ;;  %s1024_s17 = smov [#allocation2]  }
  0x50   : > { %p927_p1 = scmp.ne.s32.totalorder %s1176_s11, %s926_s8  ;;  %s931_s18 = sshll.u32 %s1024_s17, 4  ;;  %s932_s18 = int_to_ptr.vmem [resolvable:$false] %s931_s18 }
  0x51   : > { %s933_s20 = scalar_lea.vmem %s932_s18, 256  ;;  %p934_p9 = scmp.lt.s32.totalorder %s1176_s11, %s932_s18 }
  0x52   : > { %p929_p2 = pnand %p927_p1, %p915_p7  ;;  %p935_p6 = scmp.lt.s32.totalorder %s933_s20, %s926_s8 }
  0x54   : > { %p930_p3 = pneg %p929_p2  ;;  %p936_p4 = por %p935_p6, %p934_p9 }
  0x56   : > { %p937_p8 = pnand %p936_p4, %p930_p3 }
  0x58   : > { %940 = shalt.err (!%p937_p8)
}
  0x59   : > { %s1286_s15 = smov 4   ;;  %s1287_s30 = smov 64  }
  0x5a   : > { %761 = dma.hbm_to_vmem [thread:$0]  (!%p1172_p11), %s1170_s9, 128, %s1176_s11, %s1178_s14, %s1287_s30, %s1287_s30, %s1286_s15  }
  0x5b   : > { %p1288_p7 = scmp.ne.s32.totalorder %s1281_s29, 0 }
  0x5c   : > { %s1205_s17 = sand.u32 (!%p1288_p7), 1, %s1005_s22   ;;  %p1289_p4 = scmp.ne.s32.totalorder (!%p1288_p7), %s1279_s27, 0 }
  0x5d   : > { %267 = sbr.rel (%p1288_p7) target bundleno = 556 (0x22c), region = 44  ;;  %s677_s18 = sshll.u32 (!%p1288_p7), %s1205_s17, 3 }
  0x5e   : > { %s270_s26 = scalar_lea.sflag (!%p1288_p7), [#allocation3], %s1205_s17  ;;  %s1209_s7 = scalar_lea.vmem (!%p1288_p7), [#allocation2], %s677_s18 }
  0x62   : > { %984 = dma.done.wait (%p1289_p4), %s270_s26, 128  }
  0x63   : > { %986 = vsyncadd (%p1289_p4), %s270_s26, 4294967168  ;;  %p1290_p8 = scmp.eq.s32.totalorder %s1085_s25, 0 }
  0x65   : > { %988 = dma.done.wait (%p1290_p8), [#allocation6], 1664   ;;  %p1291_p6 = pmov %p1290_p8 }
  0x67   : > { %990 = vsyncadd (%p1291_p6), [#allocation6], 4294965632  ;;  %p1292_p11 = pmov %p1291_p6 }
  0x68   : > { %p1293_p13 = pmov %p1291_p6 }
  0x69   : > { %992 = dma.done.wait (%p1292_p11), [#allocation9], 512  }
  0x6a   : > { %994 = vsyncadd (%p1293_p13), [#allocation9], 4294966784  ;;  %v1025_v0 = vmov 0   ;;  %v1026_v1 = vmov 0.0   ;;  %v321_v2 = vld [vmem:[#allocation5 + $0x20] sm:$0xff]  ;;  %vm368_vm0 = vcmask 1043456   ;;  %v324_v19 = vlaneseq }
  0x6b   : > { %407 = vmatprep.mubr.bf16.mxu0 %v1025_v0  ;;  %712 = vmatprep.subr.bf16.mxu1 %v1026_v1  ;;  %v687_v3 = vcombine.high %v321_v2, %v321_v2  ;;  %v686_v4 = vcombine.low %v321_v2, %v321_v2  ;;  %v820_v5 = vld [vmem:[#allocation5 + $0x14] ss:$8 sps:$4 sm:$0xff]   ;;  %v822_v6 = vld [vmem:[#allocation5 + $0x10] ss:$8 sps:$4 sm:$0xff]   ;;  %v827_v8 = vld [vmem:[#allocation7 + $0x38] sm:$0xff]   ;;  %vm364_vm1 = vcmask 326656  }
  0x6c   : > { %v823_v9 = vld [vmem:[#allocation5 + $0x4] ss:$8 sps:$4 sm:$0xff]   ;;  %713 = vmatpush3.bf16.msra.mxu1 %v827_v8  ;;  %v828_v10 = vld [vmem:[#allocation7 + $0x30] sm:$0xff]   ;;  %v825_v11 = vld [vmem:[#allocation5] ss:$8 sps:$4 sm:$0xff]   ;;  %vm1027_vm2 = vmmov 0  }
  0x6d   : > { %688 = vmatprep.subr.msk.bf16.mxu0 %vm368_vm0, %v687_v3  ;;  %v370_v7 = vsel %vm368_vm0, %v686_v4, 0  ;;  %714 = vmatprep.subr.bf16.mxu1 %v1026_v1  ;;  %v829_v12 = vld [vmem:[#allocation7 + $0x28] sm:$0xff]   ;;  %v830_v14 = vld [vmem:[#allocation7 + $0x20] sm:$0xff]   ;;  %v831_v15 = vld [vmem:[#allocation7 + $0x18] sm:$0xff]   ;;  %v325_v20 = vshrl.u32 %v324_v19, 7  ;;  %s699_s12 = sshll.u32 %s1085_s25, 4 }
  0x6e   : > { %386 = vmatpush1.bf16.msra.mxu0 %v370_v7  ;;  %v826_v13 = vld [vmem:[%s1209_s7] sm:$0xff]   ;;  %v834_v18 = vld [vmem:[#allocation7] sm:$0xff]   ;;  %728 = vmatprep.mubr.msk.bf16.mxu1 %vm1027_vm2, %v1026_v1  ;;  %v538_v36 = vld [vmem:[#allocation8 + $0x18] sm:$0xff]  ;;  %s312_s14 = scalar_lea.vmem [#allocation10], %s1205_s17  ;;  %s570_s15 = scalar_lea.hbm %s1272_s6, %s699_s12 }
  0x6f   : > { %387 = vmatprep.subr.bf16.mxu0 %v820_v5  ;;  %v832_v16 = vld [vmem:[#allocation7 + $0x10] sm:$0xff]   ;;  %v833_v17 = vld [vmem:[#allocation7 + $0x8] sm:$0xff]   ;;  %v326_v21 = vsub.s32 0, %v325_v20  ;;  %v330_v32 = vsub.s32 1, %v325_v20  ;;  %v535_v50 = vld [vmem:[#allocation8] sm:$0xff]  ;;  %s572_s10 = sshll.u32 %s312_s14, 4  ;;  %s573_s10 = int_to_ptr.vmem [resolvable:$true] %s572_s10 }
  0x70   : > { %715 = vmatpush3.bf16.msra.mxu1 %v828_v10  ;;  %v322_v22 = vld [vmem:[%s1268_s2] sm:$0x3]  ;;  %v537_v51 = vld [vmem:[#allocation8 + $0x10] sm:$0xff]  ;;  %s560_s30 = scalar_lea.sflag [#allocation4], %s1205_s17  ;;  %s941_s18 = scalar_lea.vmem %s573_s10, 16 }
  0x71   : > { %716 = vmatprep.subr.bf16.mxu1 %v1026_v1  ;;  %v327_v23 = vrot.slane %v322_v22, %v326_v21  ;;  %v331_v34 = vrot.slane %v322_v22, %v330_v32  ;;  %v536_v38 = vld [vmem:[#allocation8 + $0x8] sm:$0xff]  ;;  %p942_p12 = scmp.ne.s32.totalorder %s573_s10, %s941_s18  ;;  %p1294_p0 = scmp.ne.s32.totalorder %s1284_s19, 0 }
  0x72   : > { %388 = vmatpush1.bf16.msra.mxu0 %v822_v6  ;;  %v690_v41 = vld [vmem:[%s1270_s4] ss:$0 sm:$0xff]  ;;  %s1028_s26 = smov [#allocation10]  }
  0x73   : > { %389 = vmatprep.subr.bf16.mxu0 %v823_v9  ;;  %p943_p5 = pnand %p942_p12, %p1294_p0  ;;  %s945_s7 = sshll.u32 %s1028_s26, 4  ;;  %s946_s7 = int_to_ptr.vmem [resolvable:$false] %s945_s7 }
  0x74   : > { %717 = vmatpush3.bf16.msra.mxu1 %v829_v12  ;;  %s947_s25 = scalar_lea.vmem %s946_s7, 32  ;;  %p948_p1 = scmp.lt.s32.totalorder %s573_s10, %s946_s7 }
  0x75   : > { %718 = vmatprep.subr.bf16.mxu1 %v1026_v1  ;;  %p944_p10 = pneg %p943_p5  ;;  %p949_p2 = scmp.lt.s32.totalorder %s947_s25, %s941_s18 }
  0x76   : > { %390 = vmatpush1.bf16.msra.mxu0 %v825_v11 }
  0x77   : > { %p950_p3 = por %p949_p2, %p948_p1 }
  0x78   : > { %719 = vmatpush3.bf16.msra.mxu1 %v830_v14 }
  0x79   : > { %689 = vmatmul.mubr.msk.bf16.vlgmr.msra.gmra.mxu0 %vm364_vm1, %v826_v13  ;;  %720 = vmatprep.subr.bf16.mxu1 %v1026_v1  ;;  %p951_p9 = pnand %p950_p3, %p944_p10 }
  0x7c   : > { %721 = vmatpush3.bf16.msra.mxu1 %v831_v15 }
  0x7d   : > { %722 = vmatprep.subr.bf16.mxu1 %v1026_v1 }
  0x80   : > { %723 = vmatpush3.bf16.msra.mxu1 %v832_v16 }
  0x81   : > { %724 = vmatprep.subr.bf16.mxu1 %v1026_v1 }
  0x84   : > { %725 = vmatpush3.bf16.msra.mxu1 %v833_v17 }
  0x85   : > { %726 = vmatprep.subr.bf16.mxu1 %v1026_v1 }
  0x88   : > { %727 = vmatpush3.bf16.msra.mxu1 %v834_v18 }
 0x139   : > { %v409_v24 = vpop.f32.mrf.mxu0 }
 0x13a   : > { %v410_v26 = vadd.f32 %v409_v24, %v327_v23 }
 0x13b   : > { %v411_v25 = vpop.f32.mrf.mxu0 }
 0x13c   : > { %v418_v29 = vmax.f32 %v410_v26, 0.0  ;;  %v412_v37 = vadd.f32 %v411_v25, %v331_v34 }
 0x13d   : > { %v413_v27 = vpop.f32.mrf.mxu0 }
 0x13e   : > { %v414_v28 = vadd.f32 %v413_v27, %v327_v23  ;;  %v548_v40 = vadd.f32 %v536_v38, %v412_v37 }
 0x13f   : > { %v415_v33 = vpop.f32.mrf.mxu0 }
 0x140   : > { %v419_v30 = vmax.f32 %v414_v28, 0.0  ;;  %v416_v35 = vadd.f32 %v415_v33, %v331_v34 }
 0x142   : > { %v420_v31 = vpack.c.bf16 %v419_v30, %v418_v29  ;;  %v549_v39 = vadd.f32 %v538_v36, %v416_v35 }
 0x144   : > { %729 = vmatmul.mubr.bf16.vlgmr.msra.gmra.mxu1 %v420_v31  ;;  %v550_v42 = vmax.f32 %v548_v40, %v549_v39 }
 0x146   : > { %v551_v46 = vrot.slane %v550_v42, 4 }
 0x148   : > { %v552_v53 = vmax.f32 %v550_v42, %v551_v46 }
 0x14a   : > { %v553_v57 = vrot.slane %v552_v53, 2 }
 0x14c   : > { %v554_v60 = vmax.f32 %v552_v53, %v553_v57 }
 0x14e   : > { %v555_v63 = vrot.slane %v554_v60, 1 }
 0x150   : > { %v556_v2 = vmax.f32 %v554_v60, %v555_v63 }
 0x204   : > { %v526_v43 = vpop.f32.mrf.mxu1 }
 0x205   : > { %v527_v44 = vadd.f32 %v690_v41, %v526_v43 }
 0x206   : > { %v730_v45 = vpop.f32.mrf.mxu1 }
 0x207   : > { %v533_v48 = vmax.f32 %v527_v44, 0.0 }
 0x208   : > { %v529_v47 = vpop.f32.mrf.mxu1 }
 0x209   : > { %v530_v49 = vadd.f32 %v690_v41, %v529_v47  ;;  %v539_v55 = vadd.f32 %v535_v50, %v533_v48 }
 0x20a   : > { %v731_v52 = vpop.f32.mrf.mxu1 }
 0x20b   : > { %v534_v54 = vmax.f32 %v530_v49, 0.0 }
 0x20d   : > { %v540_v56 = vadd.f32 %v537_v51, %v534_v54 }
 0x20f   : > { %v541_v58 = vmax.f32 %v539_v55, %v540_v56 }
 0x211   : > { %v542_v59 = vrot.slane %v541_v58, 4 }
 0x213   : > { %v543_v61 = vmax.f32 %v541_v58, %v542_v59 }
 0x215   : > { %v544_v62 = vrot.slane %v543_v61, 2 }
 0x217   : > { %v545_v0 = vmax.f32 %v543_v61, %v544_v62 }
 0x219   : > { %v546_v1 = vrot.slane %v545_v0, 1 }
 0x21b   : > { %v547_v3 = vmax.f32 %v545_v0, %v546_v1 }
 0x21d   : > { %v557_v4 = vadd.f32 %v556_v2, %v547_v3 }
 0x21f   : > { %558 = vst [vmem:[%s312_s14] sm:$0x1] %v557_v4 }
 0x220   : > { %954 = shalt.err (!%p951_p9)
}
 0x221   : > { %s955_s27 = scalar_lea.hbm %s570_s15, 16  ;;  %s959_s9 = scalar_lea.hbm %s1272_s6, 32 }
 0x222   : > { %p956_p7 = scmp.ne.s32.totalorder %s570_s15, %s955_s27  ;;  %p960_p6 = scmp.lt.s32.totalorder %s570_s15, %s1272_s6 }
 0x223   : > { %p961_p11 = scmp.lt.s32.totalorder %s959_s9, %s955_s27 }
 0x224   : > { %p957_p4 = pnand %p956_p7, %p1294_p0 }
 0x225   : > { %p962_p13 = por %p961_p11, %p960_p6 }
 0x226   : > { %p958_p8 = pneg %p957_p4 }
 0x228   : > { %p963_p12 = pnand %p962_p13, %p958_p8 }
 0x22a   : > { %966 = shalt.err (!%p963_p12)
}
 0x22b   : > { %746 = dma.vmem_to_hbm [thread:$0]  (%p1294_p0), %s573_s10, 16, %s570_s15, %s560_s30  }
 0x22c PF: > { %s584_s14 = sand.u32 1, %s1001_s21   ;;  %p1295_p5 = scmp.ne.s32.totalorder %s1280_s28, 0 }
 0x22d   : > { %p1296_p10 = scmp.ge.s32.totalorder %s1013_s24, 2  ;;  %s585_s8 = scalar_lea.sflag [#allocation4], %s584_s14 }
 0x22f   : > { %p763_p1 = pnand %p1296_p10, %p1295_p5 }
 0x231   : > { %p764_p2 = pneg %p763_p1 }
 0x233   : > { %996 = dma.done.wait (%p764_p2), %s585_s8, 16  }
 0x234   : > { %998 = vsyncadd (%p764_p2), %s585_s8, 4294967280  ;;  %p21_p3 = scmp.ge.s32.totalorder %s1147_s13, 4   ;;  %s1297_s21 = smov %s1005_s22 }
 0x235   : > { %s1298_s22 = smov %s1009_s23  ;;  %s1299_s23 = smov %s1157_s16 }
 0x236   : > { %s1300_s24 = smov %s1147_s13  ;;  %23 = sbr.rel (!%p21_p3) target bundleno = 7 (0x7), region = 101 }
 0x23b   :  { %589 = vsyncpa [#allocation3], 1 }
 0x23c   :  { %591 = vsyncpa [#allocation3 + $0x1], 1 }
 0x23d   :  { %592 = vsyncpa [#allocation6], 1 }
 0x23e   :  { %593 = vsyncpa [#allocation9], 1 }
 0x23f   :  { %594 = vsyncpa [#allocation4], 1 }
 0x240   :  { %596 = vsyncpa [#allocation4 + $0x1], 1 }

</bundles_post_ra>
